<compile_context>
chip_gen: v5e
topology: v5e:2x2
jax: 0.10.0
libtpu: 0.0.40
codegen_flags: <defaults>
</compile_context>

<pallas_src>
import math
import jax
import jax.numpy as jnp
from jax.experimental import pallas as pl
from jax.experimental.pallas import tpu as pltpu


def _round_up(n, m):
    return ((n + m - 1) // m) * m


def maml_mlp_kernel(x_ref, w0_ref, b0_ref, w1_ref, b1_ref, w2_ref, b2_ref, o_ref):
    """Fused 3-layer MLP: relu(relu(x@W0+b0)@W1+b1)@W2+b2, fully VMEM-resident."""
    x = x_ref[...]

    h = jnp.dot(x, w0_ref[...], preferred_element_type=jnp.float32) + b0_ref[...]
    h = jnp.maximum(h, 0.0)

    h = jnp.dot(h, w1_ref[...], preferred_element_type=jnp.float32) + b1_ref[...]
    h = jnp.maximum(h, 0.0)

    y = jnp.dot(h, w2_ref[...], preferred_element_type=jnp.float32) + b2_ref[...]
    o_ref[...] = y.astype(o_ref.dtype)


def maml_forward(x, weights, biases, *, num_batch_tiles=1):
    """Runs the fused MLP kernel.

    num_batch_tiles=1 (default) processes the whole batch in a single grid
    step — optimal on v5e/v6e (1 TensorCore).  Pass num_batch_tiles=2 on v7x
    (2 TensorCores) for large batches; falls back to 1 if B isn't divisible.
    """
    assert len(weights) == 3 and len(biases) == 3
    B, n_in = x.shape
    h0 = weights[0].shape[1]
    h1 = weights[1].shape[1]
    n_out = weights[2].shape[1]

    if num_batch_tiles < 1 or B % num_batch_tiles != 0:
        num_batch_tiles = 1
    tile_b = B // num_batch_tiles

    # Lane-dense output: pad the final layer to a multiple of 128 output
    # columns (zero weights + zero bias => padded columns are exactly 0).
    n_out_pad = _round_up(n_out, 128)
    w2 = jnp.pad(weights[2], ((0, 0), (0, n_out_pad - n_out)))
    b2 = jnp.pad(biases[2], (0, n_out_pad - n_out)).reshape(1, n_out_pad)

    # Biases as (1, N) 2-D tiles (TPU-friendly layout).
    b0 = biases[0].reshape(1, h0)
    b1 = biases[1].reshape(1, h1)

    flops = 2 * B * (n_in * h0 + h0 * h1 + h1 * n_out_pad)
    bytes_accessed = 4 * (
        x.size
        + weights[0].size + h0
        + weights[1].size + h1
        + w2.size + n_out_pad
        + B * n_out_pad
    )

    grid_spec = pl.GridSpec(
        grid=(num_batch_tiles,),
        in_specs=[
            pl.BlockSpec((tile_b, n_in), lambda i: (i, 0)),      # x
            pl.BlockSpec((n_in, h0), lambda i: (0, 0)),          # W0
            pl.BlockSpec((1, h0), lambda i: (0, 0)),             # b0
            pl.BlockSpec((h0, h1), lambda i: (0, 0)),            # W1
            pl.BlockSpec((1, h1), lambda i: (0, 0)),             # b1
            pl.BlockSpec((h1, n_out_pad), lambda i: (0, 0)),     # W2 (padded)
            pl.BlockSpec((1, n_out_pad), lambda i: (0, 0)),      # b2 (padded)
        ],
        out_specs=pl.BlockSpec((tile_b, n_out_pad), lambda i: (i, 0)),
    )

    y_pad = pl.pallas_call(
        maml_mlp_kernel,
        out_shape=jax.ShapeDtypeStruct((B, n_out_pad), jnp.float32),
        grid_spec=grid_spec,
        compiler_params=pltpu.CompilerParams(
            dimension_semantics=("parallel",),
        ),
        cost_estimate=pl.CostEstimate(
            flops=flops, transcendentals=0, bytes_accessed=bytes_accessed
        ),
    )(x, weights[0], b0, weights[1], b1, w2, b2)

    # Slice the real output columns back out (padded columns are zeros).
    return y_pad[:, :n_out]


def init_maml_params(key, n_inputs, n_outputs, n_weights):
    """Deterministic re-implementation of MamlModel._reset_parameters:
    weight_i ~ U(-stdv, stdv), bias_i ~ U(-stdv, stdv),
    stdv = 1/sqrt(nodes_per_layer[i]),  weight_i shape = (prev, nodes[i])."""
    nodes_per_layer = list(n_weights) + [n_outputs]
    weights, biases = [], []
    prev = n_inputs
    for n in nodes_per_layer:
        stdv = 1.0 / math.sqrt(n)
        key, kw, kb = jax.random.split(key, 3)
        weights.append(
            jax.random.uniform(kw, (prev, n), jnp.float32, minval=-stdv, maxval=stdv)
        )
        biases.append(
            jax.random.uniform(kb, (n,), jnp.float32, minval=-stdv, maxval=stdv)
        )
        prev = n
    return weights, biases


def maml_forward_ref(x, weights, biases):
    """Pure-JAX reference matching the PyTorch forward."""
    h = x
    for i in range(len(weights) - 1):
        h = jnp.maximum(h @ weights[i] + biases[i], 0.0)
    return h @ weights[-1] + biases[-1]


if __name__ == "__main__":
    key = jax.random.PRNGKey(0)

    # Small shapes consistent with sinusoidal-MAML style usage.
    n_inputs, n_outputs = 4, 1
    n_weights = [32, 32]          # two hidden layers
    batch = 64

    key, kparam, kx = jax.random.split(key, 3)
    weights, biases = init_maml_params(kparam, n_inputs, n_outputs, n_weights)
    x = jax.random.normal(kx, (batch, n_inputs), jnp.float32)

    # Single-step grid: whole batch in one kernel invocation.
    y = maml_forward(x, weights, biases, num_batch_tiles=1)
    y = jax.block_until_ready(y)

    y_ref = maml_forward_ref(x, weights, biases)
    assert y.shape == (batch, n_outputs)
    assert jnp.allclose(y, y_ref, atol=1e-5, rtol=1e-5)

    print("KERNEL_OK")
</pallas_src>

<mosaic_0001>
module attributes {stable_mosaic.version = 11 : i64} {
  func.func @maml_mlp_kernel(%arg0: i32, %arg1: memref<64x4xf32, #tpu.memory_space<vmem>>, %arg2: memref<4x32xf32, #tpu.memory_space<vmem>>, %arg3: memref<1x32xf32, #tpu.memory_space<vmem>>, %arg4: memref<32x32xf32, #tpu.memory_space<vmem>>, %arg5: memref<1x32xf32, #tpu.memory_space<vmem>>, %arg6: memref<32x128xf32, #tpu.memory_space<vmem>>, %arg7: memref<1x128xf32, #tpu.memory_space<vmem>>, %arg8: memref<64x128xf32, #tpu.memory_space<vmem>>) attributes {dimension_semantics = [#tpu.dimension_semantics<parallel>], iteration_bounds = array<i64: 1>, scalar_prefetch = 0 : i64, scratch_operands = 0 : i64, tpu.core_type = #tpu.core_type<tc>, window_params = [{transform_indices = @transform_0, window_bounds = array<i64: 64, 4>}, {pipeline_mode = #tpu.pipeline_mode<synchronous>, transform_indices = @transform_1, window_bounds = array<i64: 4, 32>}, {pipeline_mode = #tpu.pipeline_mode<synchronous>, transform_indices = @transform_2, window_bounds = array<i64: 1, 32>}, {pipeline_mode = #tpu.pipeline_mode<synchronous>, transform_indices = @transform_3, window_bounds = array<i64: 32, 32>}, {pipeline_mode = #tpu.pipeline_mode<synchronous>, transform_indices = @transform_4, window_bounds = array<i64: 1, 32>}, {pipeline_mode = #tpu.pipeline_mode<synchronous>, transform_indices = @transform_5, window_bounds = array<i64: 32, 128>}, {pipeline_mode = #tpu.pipeline_mode<synchronous>, transform_indices = @transform_6, window_bounds = array<i64: 1, 128>}, {transform_indices = @transform_7, window_bounds = array<i64: 64, 128>}]} {
    %c0 = arith.constant 0 : index
    %c0_0 = arith.constant 0 : index
    %0 = vector.load %arg1[%c0, %c0_0] : memref<64x4xf32, #tpu.memory_space<vmem>>, vector<64x4xf32>
    %c0_1 = arith.constant 0 : index
    %c0_2 = arith.constant 0 : index
    %1 = vector.load %arg2[%c0_1, %c0_2] : memref<4x32xf32, #tpu.memory_space<vmem>>, vector<4x32xf32>
    %cst = arith.constant dense<0.000000e+00> : vector<64x32xf32>
    %2 = tpu.matmul %0, %1, %cst {dimension_numbers = #tpu.dot_dimension_numbers<[1], [0], [0], [1], [0, 0, 1, 1], [], []>} : vector<64x4xf32>, vector<4x32xf32>, vector<64x32xf32> -> vector<64x32xf32>
    %c0_3 = arith.constant 0 : index
    %c0_4 = arith.constant 0 : index
    %3 = vector.load %arg3[%c0_3, %c0_4] : memref<1x32xf32, #tpu.memory_space<vmem>>, vector<1x32xf32>
    %4 = vector.broadcast %3 : vector<1x32xf32> to vector<64x32xf32>
    %5 = arith.addf %2, %4 : vector<64x32xf32>
    %cst_5 = arith.constant 0.000000e+00 : f32
    %6 = vector.broadcast %cst_5 : f32 to vector<64x32xf32>
    %7 = arith.maximumf %5, %6 : vector<64x32xf32>
    %c0_6 = arith.constant 0 : index
    %c0_7 = arith.constant 0 : index
    %8 = vector.load %arg4[%c0_6, %c0_7] : memref<32x32xf32, #tpu.memory_space<vmem>>, vector<32x32xf32>
    %cst_8 = arith.constant dense<0.000000e+00> : vector<64x32xf32>
    %9 = tpu.matmul %7, %8, %cst_8 {dimension_numbers = #tpu.dot_dimension_numbers<[1], [0], [0], [1], [0, 0, 1, 1], [], []>} : vector<64x32xf32>, vector<32x32xf32>, vector<64x32xf32> -> vector<64x32xf32>
    %c0_9 = arith.constant 0 : index
    %c0_10 = arith.constant 0 : index
    %10 = vector.load %arg5[%c0_9, %c0_10] : memref<1x32xf32, #tpu.memory_space<vmem>>, vector<1x32xf32>
    %11 = vector.broadcast %10 : vector<1x32xf32> to vector<64x32xf32>
    %12 = arith.addf %9, %11 : vector<64x32xf32>
    %cst_11 = arith.constant 0.000000e+00 : f32
    %13 = vector.broadcast %cst_11 : f32 to vector<64x32xf32>
    %14 = arith.maximumf %12, %13 : vector<64x32xf32>
    %c0_12 = arith.constant 0 : index
    %c0_13 = arith.constant 0 : index
    %15 = vector.load %arg6[%c0_12, %c0_13] : memref<32x128xf32, #tpu.memory_space<vmem>>, vector<32x128xf32>
    %cst_14 = arith.constant dense<0.000000e+00> : vector<64x128xf32>
    %16 = tpu.matmul %14, %15, %cst_14 {dimension_numbers = #tpu.dot_dimension_numbers<[1], [0], [0], [1], [0, 0, 1, 1], [], []>} : vector<64x32xf32>, vector<32x128xf32>, vector<64x128xf32> -> vector<64x128xf32>
    %c0_15 = arith.constant 0 : index
    %c0_16 = arith.constant 0 : index
    %17 = vector.load %arg7[%c0_15, %c0_16] : memref<1x128xf32, #tpu.memory_space<vmem>>, vector<1x128xf32>
    %18 = vector.broadcast %17 : vector<1x128xf32> to vector<64x128xf32>
    %19 = arith.addf %16, %18 : vector<64x128xf32>
    %c0_17 = arith.constant 0 : index
    %c0_18 = arith.constant 0 : index
    %20 = vector.load %arg8[%c0_17, %c0_18] : memref<64x128xf32, #tpu.memory_space<vmem>>, vector<64x128xf32>
    tpu.vector_store %arg8[%c0_17, %c0_18], %19 {strides = array<i32>} : memref<64x128xf32, #tpu.memory_space<vmem>>, vector<64x128xf32>,
    return
  }
  func.func @transform_0(%arg0: i32) -> (i32, i32) {
    %c0_i32 = arith.constant 0 : i32
    %c0_i32_0 = arith.constant 0 : i32
    return %arg0, %c0_i32 : i32, i32
  }
  func.func @transform_1(%arg0: i32) -> (i32, i32) {
    %c0_i32 = arith.constant 0 : i32
    %c0_i32_0 = arith.constant 0 : i32
    %c0_i32_1 = arith.constant 0 : i32
    return %c0_i32, %c0_i32_0 : i32, i32
  }
  func.func @transform_2(%arg0: i32) -> (i32, i32) {
    %c0_i32 = arith.constant 0 : i32
    %c0_i32_0 = arith.constant 0 : i32
    %c0_i32_1 = arith.constant 0 : i32
    return %c0_i32, %c0_i32_0 : i32, i32
  }
  func.func @transform_3(%arg0: i32) -> (i32, i32) {
    %c0_i32 = arith.constant 0 : i32
    %c0_i32_0 = arith.constant 0 : i32
    %c0_i32_1 = arith.constant 0 : i32
    return %c0_i32, %c0_i32_0 : i32, i32
  }
  func.func @transform_4(%arg0: i32) -> (i32, i32) {
    %c0_i32 = arith.constant 0 : i32
    %c0_i32_0 = arith.constant 0 : i32
    %c0_i32_1 = arith.constant 0 : i32
    return %c0_i32, %c0_i32_0 : i32, i32
  }
  func.func @transform_5(%arg0: i32) -> (i32, i32) {
    %c0_i32 = arith.constant 0 : i32
    %c0_i32_0 = arith.constant 0 : i32
    %c0_i32_1 = arith.constant 0 : i32
    return %c0_i32, %c0_i32_0 : i32, i32
  }
  func.func @transform_6(%arg0: i32) -> (i32, i32) {
    %c0_i32 = arith.constant 0 : i32
    %c0_i32_0 = arith.constant 0 : i32
    %c0_i32_1 = arith.constant 0 : i32
    return %c0_i32, %c0_i32_0 : i32, i32
  }
  func.func @transform_7(%arg0: i32) -> (i32, i32) {
    %c0_i32 = arith.constant 0 : i32
    %c0_i32_0 = arith.constant 0 : i32
    return %arg0, %c0_i32 : i32, i32
  }
}

</mosaic_0001>

<bundles_post_ra>
// kernel: tpu_custom_call.1
= control target key start
LH: loop header
LB: loop body
LE: loop exit
PB: predicated region body
PF: predicated region fallthrough
CT: control target
= control target key end

     0   :  { %vm65_vm0 = vcmask 1043456   ;;  %vm40_vm1 = vcmask 31744   ;;  %s495_s0 = inlined_call_operand.vmem [shape: f32[64,4], index: 0, kind: input, shape index: {}]   ;;  %s496_s1 = inlined_call_operand.vmem [shape: f32[4,32], index: 1, kind: input, shape index: {}]   ;;  %s497_s2 = inlined_call_operand.vmem [shape: f32[1,32], index: 2, kind: input, shape index: {}]   ;;  %s498_s3 = inlined_call_operand.vmem [shape: f32[32,32], index: 3, kind: input, shape index: {}]   ;;  %s499_s4 = inlined_call_operand.vmem [shape: f32[1,32], index: 4, kind: input, shape index: {}]   ;;  %s500_s5 = inlined_call_operand.vmem [shape: f32[32,128], index: 5, kind: input, shape index: {}]   ;;  %s501_s6 = inlined_call_operand.vmem [shape: f32[1,128], index: 6, kind: input, shape index: {}]   ;;  %s502_s7 = inlined_call_operand.hbm [shape: f32[64,128], index: 7, kind: output, shape index: {}]  }
   0x1   :  { %v35_v0 = vld [vmem:[%s496_s1] sm:$0xf] }
   0x2   :  { %v27_v1 = vld [vmem:[%s495_s0] sm:$0xff]  ;;  %299 = vmatpush.msk.msra.mxu0 %vm65_vm0, %v35_v0  ;;  %324 = vmatpush.msk.msra.mxu3 %vm65_vm0, %v35_v0 }
   0x3   :  { %300 = vmatmul.msk.f32.vlgmr.msra.gmra.mxu0 %vm40_vm1, %v27_v1 }
   0x4   :  { %12 = vsyncpa [#allocation3], 0  ;;  %v28_v2 = vld [vmem:[%s495_s0 + $0x8] sm:$0xff]  ;;  %v29_v3 = vld [vmem:[%s495_s0 + $0x10] sm:$0xff]  ;;  %vm126_vm2 = vcmask 261120   ;;  %s287_s14 = sshll.u32 %s502_s7, 4  ;;  %s288_s14 = int_to_ptr.hbm [resolvable:$true] %s287_s14 }
   0x5   :  { %v34_v4 = vld [vmem:[%s495_s0 + $0x38] sm:$0xff]  ;;  %v31_v7 = vld [vmem:[%s495_s0 + $0x20] sm:$0xff]  ;;  %v32_v8 = vld [vmem:[%s495_s0 + $0x28] sm:$0xff]  ;;  %s366_s15 = smov 128   ;;  %s367_s16 = smov 8  }
   0x6   :  { %v121_v5 = vld [vmem:[%s498_s3 + $0x18] sm:$0xff]  ;;  %307 = vmatmul.msk.f32.vlgmr.msra.gmra.mxu3 %vm40_vm1, %v34_v4  ;;  %v33_v9 = vld [vmem:[%s495_s0 + $0x30] sm:$0xff]  ;;  %v119_v11 = vld [vmem:[%s498_s3 + $0x8] sm:$0xff] }
   0x7   :  { %163 = vmatpush.msra.mxu1 %v121_v5  ;;  %325 = vmatpush.msrb.mxu3 %v121_v5  ;;  %v30_v6 = vld [vmem:[%s495_s0 + $0x18] sm:$0xff]  ;;  %v120_v10 = vld [vmem:[%s498_s3 + $0x10] sm:$0xff]  ;;  %v118_v12 = vld [vmem:[%s498_s3] sm:$0xff] }
   0x8   :  { %v336_v13 = vld [vmem:[%s497_s2] ss:$0 sm:$0xff]  ;;  %v203_v26 = vld [vmem:[%s500_s5 + $0x18] sm:$0xff]  ;;  %v202_v39 = vld [vmem:[%s500_s5 + $0x10] sm:$0xff] }
   0x9   :  { %164 = vmatpush.msra.mxu1 %v120_v10  ;;  %326 = vmatpush.msrb.mxu3 %v120_v10  ;;  %v201_v40 = vld [vmem:[%s500_s5 + $0x8] sm:$0xff]  ;;  %v200_v41 = vld [vmem:[%s500_s5] sm:$0xff] }
   0xa   :  { %244 = vmatpush.msra.mxu2 %v203_v26  ;;  %v337_v42 = vld [vmem:[%s499_s4] ss:$0 sm:$0xff] }
   0xb   :  { %301 = vmatmul.msk.f32.gmra.mxu0 %vm40_vm1, %v28_v2  ;;  %165 = vmatpush.msra.mxu1 %v119_v11 }
   0xc   :  { %327 = vmatpush.msrb.mxu3 %v119_v11  ;;  %245 = vmatpush.msra.mxu2 %v202_v39 }
   0xd   :  { %166 = vmatpush.msra.mxu1 %v118_v12 }
   0xe   :  { %328 = vmatpush.msrb.mxu3 %v118_v12  ;;  %246 = vmatpush.msra.mxu2 %v201_v40 }
  0x10   :  { %329 = vmatpush.msra.mxu3 %v203_v26  ;;  %247 = vmatpush.msra.mxu2 %v200_v41 }
  0x12   :  { %330 = vmatpush.msra.mxu3 %v202_v39 }
  0x13   :  { %302 = vmatmul.msk.f32.gmra.mxu0 %vm40_vm1, %v29_v3  ;;  %v338_v3 = vld [vmem:[%s501_s6] ss:$0 sm:$0xff]  ;;  %s365_s6 = smov [#allocation2]  }
  0x14   :  { %331 = vmatpush.msra.mxu3 %v201_v40  ;;  %s285_s11 = sshll.u32 %s365_s6, 4  ;;  %s286_s11 = int_to_ptr.vmem [resolvable:$true] %s285_s11 }
  0x16   :  { %332 = vmatpush.msra.mxu3 %v200_v41 }
  0x1b   :  { %303 = vmatmul.msk.f32.gmra.mxu0 %vm40_vm1, %v30_v6 }
  0x23   :  { %304 = vmatmul.msk.f32.gmra.mxu0 %vm40_vm1, %v31_v7 }
  0x2b   :  { %305 = vmatmul.msk.f32.gmra.mxu0 %vm40_vm1, %v32_v8 }
  0x33   :  { %306 = vmatmul.msk.f32.gmra.mxu0 %vm40_vm1, %v33_v9 }
  0x80   :  { %v86_v14 = vpop.f32.mrf.mxu0 }
  0x81   :  { %v87_v15 = vadd.f32 %v336_v13, %v86_v14 }
  0x83   :  { %v110_v16 = vmax.f32 %v87_v15, 0.0 }
  0x85   :  { %308 = vmatmul.msk.f32.vlgmr.msra.gmra.mxu1 %vm126_vm2, %v110_v16 }
  0x88   :  { %v89_v17 = vpop.f32.mrf.mxu0 }
  0x89   :  { %v90_v18 = vadd.f32 %v336_v13, %v89_v17  ;;  %v107_v35 = vpop.f32.mrf.mxu3 }
  0x8a   :  { %v108_v37 = vadd.f32 %v336_v13, %v107_v35 }
  0x8b   :  { %v111_v19 = vmax.f32 %v90_v18, 0.0 }
  0x8c   :  { %v117_v38 = vmax.f32 %v108_v37, 0.0 }
  0x8d   :  { %309 = vmatmul.msk.f32.gmra.mxu1 %vm126_vm2, %v111_v19 }
  0x90   :  { %v92_v20 = vpop.f32.mrf.mxu0 }
  0x91   :  { %v93_v21 = vadd.f32 %v336_v13, %v92_v20 }
  0x93   :  { %v112_v22 = vmax.f32 %v93_v21, 0.0 }
  0x95   :  { %310 = vmatmul.msk.f32.gmra.mxu1 %vm126_vm2, %v112_v22 }
  0x98   :  { %v95_v23 = vpop.f32.mrf.mxu0 }
  0x99   :  { %v96_v24 = vadd.f32 %v336_v13, %v95_v23 }
  0x9b   :  { %v113_v25 = vmax.f32 %v96_v24, 0.0 }
  0x9d   :  { %311 = vmatmul.msk.f32.gmra.mxu1 %vm126_vm2, %v113_v25 }
  0xa0   :  { %v98_v27 = vpop.f32.mrf.mxu0 }
  0xa1   :  { %v99_v28 = vadd.f32 %v336_v13, %v98_v27 }
  0xa3   :  { %v114_v29 = vmax.f32 %v99_v28, 0.0 }
  0xa5   :  { %312 = vmatmul.msk.f32.gmra.mxu1 %vm126_vm2, %v114_v29 }
  0xa8   :  { %v101_v30 = vpop.f32.mrf.mxu0 }
  0xa9   :  { %v102_v31 = vadd.f32 %v336_v13, %v101_v30 }
  0xab   :  { %v115_v32 = vmax.f32 %v102_v31, 0.0 }
  0xad   :  { %313 = vmatmul.msk.f32.gmra.mxu1 %vm126_vm2, %v115_v32 }
  0xb0   :  { %v104_v33 = vpop.f32.mrf.mxu0 }
  0xb1   :  { %v105_v34 = vadd.f32 %v336_v13, %v104_v33 }
  0xb3   :  { %v116_v36 = vmax.f32 %v105_v34, 0.0 }
  0xb5   :  { %314 = vmatmul.msk.f32.vlgmr.msrb.gmra.mxu3 %vm126_vm2, %v116_v36 }
  0xbd   :  { %315 = vmatmul.msk.f32.gmra.mxu3 %vm126_vm2, %v117_v38 }
 0x102   :  { %v168_v43 = vpop.f32.mrf.mxu1 }
 0x103   :  { %v169_v44 = vadd.f32 %v337_v42, %v168_v43 }
 0x105   :  { %v192_v45 = vmax.f32 %v169_v44, 0.0 }
 0x107   :  { %316 = vmatmul.msk.f32.vlgmr.msra.gmra.mxu2 %vm126_vm2, %v192_v45 }
 0x10a   :  { %v171_v46 = vpop.f32.mrf.mxu1 }
 0x10b   :  { %v172_v47 = vadd.f32 %v337_v42, %v171_v46 }
 0x10d   :  { %v193_v48 = vmax.f32 %v172_v47, 0.0 }
 0x10f   :  { %317 = vmatmul.msk.f32.gmra.mxu2 %vm126_vm2, %v193_v48 }
 0x112   :  { %v174_v49 = vpop.f32.mrf.mxu1 }
 0x113   :  { %v175_v50 = vadd.f32 %v337_v42, %v174_v49 }
 0x115   :  { %v194_v51 = vmax.f32 %v175_v50, 0.0 }
 0x117   :  { %318 = vmatmul.msk.f32.gmra.mxu2 %vm126_vm2, %v194_v51 }
 0x11a   :  { %v177_v52 = vpop.f32.mrf.mxu1 }
 0x11b   :  { %v178_v53 = vadd.f32 %v337_v42, %v177_v52 }
 0x11d   :  { %v195_v54 = vmax.f32 %v178_v53, 0.0 }
 0x11f   :  { %319 = vmatmul.msk.f32.gmra.mxu2 %vm126_vm2, %v195_v54 }
 0x122   :  { %v180_v55 = vpop.f32.mrf.mxu1 }
 0x123   :  { %v181_v56 = vadd.f32 %v337_v42, %v180_v55 }
 0x125   :  { %v196_v57 = vmax.f32 %v181_v56, 0.0 }
 0x127   :  { %320 = vmatmul.msk.f32.gmra.mxu2 %vm126_vm2, %v196_v57 }
 0x12a   :  { %v183_v58 = vpop.f32.mrf.mxu1 }
 0x12b   :  { %v184_v59 = vadd.f32 %v337_v42, %v183_v58 }
 0x12d   :  { %v197_v60 = vmax.f32 %v184_v59, 0.0 }
 0x12f   :  { %321 = vmatmul.msk.f32.gmra.mxu2 %vm126_vm2, %v197_v60 }
 0x138   :  { %v186_v61 = vpop.f32.mrf.mxu3 }
 0x139   :  { %v187_v62 = vadd.f32 %v337_v42, %v186_v61 }
 0x13b   :  { %v198_v63 = vmax.f32 %v187_v62, 0.0 }
 0x13d   :  { %322 = vmatmul.msk.f32.vlgmr.msra.gmra.mxu3 %vm126_vm2, %v198_v63 }
 0x140   :  { %v189_v0 = vpop.f32.mrf.mxu3 }
 0x141   :  { %v190_v1 = vadd.f32 %v337_v42, %v189_v0 }
 0x143   :  { %v199_v2 = vmax.f32 %v190_v1, 0.0 }
 0x145   :  { %323 = vmatmul.msk.f32.gmra.mxu3 %vm126_vm2, %v199_v2 }
 0x18a   :  { %v249_v4 = vpop.f32.mrf.mxu2 }
 0x18b   :  { %v250_v5 = vadd.f32 %v338_v3, %v249_v4 }
 0x18d   :  { %273 = vst [vmem:[#allocation2] sm:$0xff] %v250_v5 }
 0x192   :  { %v252_v6 = vpop.f32.mrf.mxu2 }
 0x193   :  { %v253_v7 = vadd.f32 %v338_v3, %v252_v6 }
 0x195   :  { %274 = vst [vmem:[#allocation2 + $0x8] sm:$0xff] %v253_v7 }
 0x19a   :  { %v255_v8 = vpop.f32.mrf.mxu2 }
 0x19b   :  { %v256_v9 = vadd.f32 %v338_v3, %v255_v8 }
 0x19d   :  { %275 = vst [vmem:[#allocation2 + $0x10] sm:$0xff] %v256_v9 }
 0x1a2   :  { %v258_v10 = vpop.f32.mrf.mxu2 }
 0x1a3   :  { %v259_v11 = vadd.f32 %v338_v3, %v258_v10 }
 0x1a5   :  { %276 = vst [vmem:[#allocation2 + $0x18] sm:$0xff] %v259_v11 }
 0x1aa   :  { %v261_v12 = vpop.f32.mrf.mxu2 }
 0x1ab   :  { %v262_v13 = vadd.f32 %v338_v3, %v261_v12 }
 0x1ad   :  { %277 = vst [vmem:[#allocation2 + $0x20] sm:$0xff] %v262_v13 }
 0x1b2   :  { %v264_v14 = vpop.f32.mrf.mxu2 }
 0x1b3   :  { %v265_v15 = vadd.f32 %v338_v3, %v264_v14 }
 0x1b5   :  { %278 = vst [vmem:[#allocation2 + $0x28] sm:$0xff] %v265_v15 }
 0x1c0   :  { %v267_v16 = vpop.f32.mrf.mxu3 }
 0x1c1   :  { %v268_v17 = vadd.f32 %v338_v3, %v267_v16 }
 0x1c3   :  { %279 = vst [vmem:[#allocation2 + $0x30] sm:$0xff] %v268_v17 }
 0x1c8   :  { %v270_v18 = vpop.f32.mrf.mxu3 }
 0x1c9   :  { %v271_v19 = vadd.f32 %v338_v3, %v270_v18 }
 0x1cb   :  { %280 = vst [vmem:[#allocation2 + $0x38] sm:$0xff] %v271_v19 }
 0x1cc   :  { %293 = dma.vmem_to_hbm [thread:$0]  %s286_s11, 1024, %s288_s14, [#allocation3], %s366_s15, %s366_s15, %s367_s16  }
 0x1cd   :  { %363 = dma.done.wait [#allocation3], 1024  }
 0x1ce   :  { %364 = vsyncadd [#allocation3], 4294966272 }
 0x1cf   :  { %298 = vsyncpa [#allocation3], 1 }

</bundles_post_ra>
